<compile_context>
chip_gen: v7x
topology: tpu7x:2x2x1
jax: 0.10.0
libtpu: 0.0.40
codegen_flags: <defaults>
</compile_context>

<pallas_src>
import jax
import jax.numpy as jnp
from jax.experimental import pallas as pl
from jax.experimental.pallas import tpu as pltpu

LANES = 128
TARGET_BLOCK_BYTES = 6 * 1024 * 1024      # ~6 MiB per block (per buffer)
MIN_GRID_STEPS = 8                        # keep the pipeline + both v7x TCs busy
VMEM_LIMIT_BYTES = 40 * 1024 * 1024       # 4 x 6 MiB buffers + headroom; < 64 MiB (v7x physical)


def _affine_kernel(x_ref, o_ref):
    # Exact op order of the PyTorch graph: ((x * 2) + 3) - 1.
    # Weak-typed int constants keep the input dtype (float or int) unchanged.
    o_ref[...] = (x_ref[...] * 2 + 3) - 1


def _choose_width(n):
    """Widest lane-dense last dim (multiple of 128) that divides n and still
    leaves enough rows to tile."""
    for w in (8192, 4096, 2048, 1024, 512, 256, 128):
        if n % w == 0 and (n // w) >= MIN_GRID_STEPS:
            return w
    return LANES


def _pick_tile_rows(rows, width, itemsize):
    """Rows per block: ~TARGET_BLOCK_BYTES, multiple of 8, but never so large
    that the grid collapses below MIN_GRID_STEPS (no pipelining / idle TC)."""
    if rows <= 8:
        return rows                                    # tiny input: one block
    row_bytes = width * itemsize
    tile = max(8, (TARGET_BLOCK_BYTES // row_bytes) // 8 * 8)
    per_step = -(-rows // MIN_GRID_STEPS)              # cdiv(rows, MIN_GRID_STEPS)
    per_step = max(8, -(-per_step // 8) * 8)           # round up to multiple of 8
    tile = min(tile, per_step)
    return min(tile, rows)


def _run_affine_2d(x2d):
    """Runs the elementwise kernel over a 2-D slab; block spans the full width."""
    rows, width = x2d.shape
    itemsize = x2d.dtype.itemsize
    tile_rows = _pick_tile_rows(rows, width, itemsize)
    grid = (pl.cdiv(rows, tile_rows),)
    n = rows * width

    return pl.pallas_call(
        _affine_kernel,
        out_shape=jax.ShapeDtypeStruct((rows, width), x2d.dtype),
        grid_spec=pltpu.PrefetchScalarGridSpec(
            num_scalar_prefetch=0,
            grid=grid,
            in_specs=[pl.BlockSpec((tile_rows, width), lambda i: (i, 0))],
            out_specs=pl.BlockSpec((tile_rows, width), lambda i: (i, 0)),
        ),
        compiler_params=pltpu.CompilerParams(
            dimension_semantics=("parallel",),
            vmem_limit_bytes=VMEM_LIMIT_BYTES,
        ),
        cost_estimate=pl.CostEstimate(
            flops=3 * n,
            transcendentals=0,
            bytes_accessed=2 * n * itemsize,
        ),
    )(x2d)


def _forward_impl(x):
    """Computes ((x*2)+3)-1 elementwise, matching PtModule.forward exactly."""
    orig_shape = x.shape
    n = x.size
    if n == 0:
        return jnp.zeros_like(x)

    x_flat = jnp.reshape(x, (-1,))            # contiguous reshape: free (bitcast)
    if n % LANES == 0:
        width = _choose_width(n)              # wide lane-dense slab (fast path)
    else:
        # Rare unaligned-size path: use the original last dim as lanes.  The
        # block's last dim equals the full array dim, so it is legal for any
        # size -- no pad / slice / concatenate and no out-of-kernel tail.
        width = orig_shape[-1] if x.ndim >= 2 else n
    x2d = jnp.reshape(x_flat, (n // width, width))
    out2d = _run_affine_2d(x2d)
    return jnp.reshape(out2d, orig_shape)


# jit so the (free) reshapes around the kernel stay copy-free.
pt_module_forward = jax.jit(_forward_impl)


if __name__ == "__main__":
    key = jax.random.PRNGKey(0)
    k0, k1 = jax.random.split(key)

    # Small NCHW input consistent with the module's >=3-D indexing.
    x = jax.random.normal(k0, (2, 4, 16, 16), dtype=jnp.float32)
    out = jax.block_until_ready(pt_module_forward(x))
    ref = (x * 2.0 + 3.0) - 1.0
    assert out.shape == x.shape and out.dtype == x.dtype
    assert jnp.allclose(out, ref, atol=1e-6, rtol=1e-6)

    # Exercise the unaligned-size path (600 elements, not a multiple of 128):
    # handled fully in-kernel, no concatenate/slice copies.
    x2 = jax.random.normal(k1, (2, 3, 10, 10), dtype=jnp.float32)
    out2 = jax.block_until_ready(pt_module_forward(x2))
    ref2 = (x2 * 2.0 + 3.0) - 1.0
    assert out2.shape == x2.shape and out2.dtype == x2.dtype
    assert jnp.allclose(out2, ref2, atol=1e-6, rtol=1e-6)

    print("KERNEL_OK")
</pallas_src>

<mosaic_0001>
module attributes {stable_mosaic.version = 11 : i64} {
  func.func @_affine_kernel(%arg0: i32, %arg1: memref<8x256xf32, #tpu.memory_space<vmem>>, %arg2: memref<8x256xf32, #tpu.memory_space<vmem>>) attributes {dimension_semantics = [#tpu.dimension_semantics<parallel>], iteration_bounds = array<i64: 1>, scalar_prefetch = 0 : i64, scratch_operands = 0 : i64, tpu.core_type = #tpu.core_type<tc>, window_params = [{transform_indices = @transform_0, window_bounds = array<i64: 8, 256>}, {transform_indices = @transform_1, window_bounds = array<i64: 8, 256>}]} {
    %c0 = arith.constant 0 : index
    %c0_0 = arith.constant 0 : index
    %0 = vector.load %arg1[%c0, %c0_0] : memref<8x256xf32, #tpu.memory_space<vmem>>, vector<8x256xf32>
    %cst = arith.constant 2.000000e+00 : f32
    %1 = vector.broadcast %cst : f32 to vector<8x256xf32>
    %2 = arith.mulf %0, %1 : vector<8x256xf32>
    %cst_1 = arith.constant 3.000000e+00 : f32
    %3 = vector.broadcast %cst_1 : f32 to vector<8x256xf32>
    %4 = arith.addf %2, %3 : vector<8x256xf32>
    %cst_2 = arith.constant 1.000000e+00 : f32
    %5 = vector.broadcast %cst_2 : f32 to vector<8x256xf32>
    %6 = arith.subf %4, %5 : vector<8x256xf32>
    %c0_3 = arith.constant 0 : index
    %c0_4 = arith.constant 0 : index
    %7 = vector.load %arg2[%c0_3, %c0_4] : memref<8x256xf32, #tpu.memory_space<vmem>>, vector<8x256xf32>
    tpu.vector_store %arg2[%c0_3, %c0_4], %6 {strides = array<i32>} : memref<8x256xf32, #tpu.memory_space<vmem>>, vector<8x256xf32>,
    return
  }
  func.func @transform_0(%arg0: i32) -> (i32, i32) {
    %c0_i32 = arith.constant 0 : i32
    %c0_i32_0 = arith.constant 0 : i32
    return %arg0, %c0_i32 : i32, i32
  }
  func.func @transform_1(%arg0: i32) -> (i32, i32) {
    %c0_i32 = arith.constant 0 : i32
    %c0_i32_0 = arith.constant 0 : i32
    return %arg0, %c0_i32 : i32, i32
  }
}

</mosaic_0001>

<bundles_post_ra>
// kernel: _forward_impl.1
= control target key start
LH: loop header
LB: loop body
LE: loop exit
PB: predicated region body
PF: predicated region fallthrough
CT: control target
= control target key end

     0   :  { %s46_s0 = inlined_call_operand.vmem [shape: f32[8,256], index: 0, kind: input, shape index: {}]   ;;  %s47_s1 = inlined_call_operand.vmem [shape: f32[8,256], index: 1, kind: output, shape index: {}]  }
   0x1   :  { %v8_v0 = vld [vmem:[%s46_s0] sm:$0xff]  ;;  %v9_v1 = vld [vmem:[%s46_s0 + $0x8] sm:$0xff] }
   0x2   :  { %v10_v2 = vmul.f32 2.0, %v8_v0  ;;  %v11_v3 = vmul.f32 2.0, %v9_v1 }
   0x4   :  { %v12_v4 = vadd.f32 3.0, %v10_v2  ;;  %v13_v5 = vadd.f32 3.0, %v11_v3 }
   0x6   :  { %v22_v6 = vadd.f32 -1.0, %v12_v4  ;;  %v23_v7 = vadd.f32 -1.0, %v13_v5 }
   0x8   :  { %16 = vst [vmem:[%s47_s1] sm:$0xff] %v22_v6  ;;  %17 = vst [vmem:[%s47_s1 + $0x8] sm:$0xff] %v23_v7 }

</bundles_post_ra>
